<compile_context>
chip_gen: v7x
topology: tpu7x:2x2x1
jax: 0.10.0
libtpu: 0.0.40
codegen_flags: <defaults>
</compile_context>

<pallas_src>
import functools
import math

import jax
import jax.numpy as jnp
from jax import lax
from jax.experimental import pallas as pl
from jax.experimental.pallas import tpu as pltpu

_LANE = 128
_SUBLANE = 8
_INV_SQRT2 = 1.0 / math.sqrt(2.0)
_BN_EPS = 1e-5


def _round_up(x, m):
    return ((x + m - 1) // m) * m


def _gelu_exact(x):
    # PyTorch nn.GELU() default = exact erf formulation (kept for parity).
    return 0.5 * x * (1.0 + lax.erf(x * _INV_SQRT2))


def _hidden_tile(x_ref, w1_ref, b1_ref):
    """h = GELU(x @ w1 + b1). f32 matmul (memory-bound anyway), f32 GELU."""
    h = jnp.dot(x_ref[...], w1_ref[...], preferred_element_type=jnp.float32)
    return _gelu_exact(h + b1_ref[...])


def _vmem_capacity_bytes():
    """Best-effort physical VMEM size; conservative (v7x) fallback."""
    try:
        info = pltpu.get_tpu_info()
        for attr in ("vmem_capacity_bytes", "vmem_bytes", "vmem_size_bytes"):
            v = getattr(info, attr, None)
            if v:
                return int(v)
    except Exception:
        pass
    return 64 * 1024 * 1024


# --------------------------------------------------------------------------
# Fused single-call path (everything VMEM-resident).
# --------------------------------------------------------------------------
def _fused_kernel(x_ref, w1_ref, b1_ref, gamma_ref, beta_ref, w2_ref, b2_ref,
                  out_ref, *, m_total, nb_class):
    h = _hidden_tile(x_ref, w1_ref, b1_ref)                    # (M, Hp) f32
    inv_m = 1.0 / float(m_total)
    mu = jnp.sum(h, axis=0, keepdims=True) * inv_m             # (1, Hp)
    d = h - mu
    var = jnp.sum(d * d, axis=0, keepdims=True) * inv_m        # centered var
    scale = lax.rsqrt(var + _BN_EPS) * gamma_ref[...]
    shift = beta_ref[...] - mu * scale
    h_norm = (h * scale + shift).astype(jnp.bfloat16)
    out = jnp.dot(h_norm, w2_ref[...],
                  preferred_element_type=jnp.float32) + b2_ref[...]
    out_ref[...] = out[:, :nb_class].astype(out_ref.dtype)


# --------------------------------------------------------------------------
# Two-pass path: pass 1 accumulates per-channel sum / sum-of-squares of h.
# --------------------------------------------------------------------------
def _stats_kernel(x_ref, w1_ref, b1_ref, sum_ref, sq_ref, *,
                  tm, m_total, tiles_per_group, first_pad_tile, mask_rows):
    c = pl.program_id(0)          # core group (parallel)
    i = pl.program_id(1)          # tile within group (arbitrary / accumulated)

    @pl.when(i == 0)
    def _():
        sum_ref[...] = jnp.zeros_like(sum_ref)
        sq_ref[...] = jnp.zeros_like(sq_ref)

    h = _hidden_tile(x_ref, w1_ref, b1_ref)                    # (tm, Hp) f32

    def _acc(hv):
        sum_ref[...] += jnp.sum(hv, axis=0, keepdims=True)[None]
        sq_ref[...] += jnp.sum(hv * hv, axis=0, keepdims=True)[None]

    if mask_rows:
        tile = c * tiles_per_group + i

        @pl.when(tile >= first_pad_tile)       # only tiles with padded rows
        def _():
            rows = lax.broadcasted_iota(jnp.int32, h.shape, 0) + tile * tm
            _acc(jnp.where(rows < m_total, h, 0.0))

        @pl.when(tile < first_pad_tile)
        def _():
            _acc(h)
    else:
        _acc(h)


def _apply_kernel(x_ref, w1_ref, b1_ref, sum_ref, sq_ref, gamma_ref, beta_ref,
                  w2_ref, b2_ref, out_ref, *, inv_m, nb_class):
    """out = BN(GELU(x@w1+b1)) @ w2 + b2 with the BN fold done in-kernel."""
    h = _hidden_tile(x_ref, w1_ref, b1_ref)                    # (tm, Hp) f32
    mu = sum_ref[...] * inv_m
    var = jnp.maximum(sq_ref[...] * inv_m - mu * mu, 0.0)      # guard f32 cancel
    scale = lax.rsqrt(var + _BN_EPS) * gamma_ref[...]
    shift = beta_ref[...] - mu * scale
    h_norm = (h * scale + shift).astype(jnp.bfloat16)
    out = jnp.dot(h_norm, w2_ref[...],
                  preferred_element_type=jnp.float32) + b2_ref[...]
    out_ref[...] = out[:, :nb_class].astype(out_ref.dtype)


# --------------------------------------------------------------------------
# Wrapper
# --------------------------------------------------------------------------
def prediction_forward(c_t, params, *, tile_m=2048, force_two_pass=False,
                       vmem_limit_bytes=32 * 1024 * 1024,
                       fused_budget_bytes=None):
    """c_t: (seq, batch, n) float32 -> (seq, batch, nb_class) float32."""
    seq, batch, n = c_t.shape
    w1, b1, gamma, beta, w2, b2 = params
    hidden = w1.shape[1]
    nb_class = w2.shape[1]

    m_total = seq * batch
    h_pad = _round_up(hidden, _LANE)
    c_pad = _round_up(nb_class, _LANE)
    f32 = jnp.float32

    x2d = c_t.reshape(m_total, n).astype(f32)

    # Hidden / class lane padding (layout plumbing; padded columns/rows are
    # zero so results are unchanged).  w2 pre-cast to bf16 once (resident).
    w1_p = jnp.pad(w1.astype(f32), ((0, 0), (0, h_pad - hidden)))
    b1_p = jnp.pad(b1.astype(f32).reshape(1, -1), ((0, 0), (0, h_pad - hidden)))
    gamma_p = jnp.pad(gamma.astype(f32).reshape(1, -1),
                      ((0, 0), (0, h_pad - hidden)))
    beta_p = jnp.pad(beta.astype(f32).reshape(1, -1),
                     ((0, 0), (0, h_pad - hidden)))
    w2_bf = jnp.pad(w2.astype(f32),
                    ((0, h_pad - hidden), (0, c_pad - nb_class))
                    ).astype(jnp.bfloat16)
    b2_p = jnp.pad(b2.astype(f32).reshape(1, -1),
                   ((0, 0), (0, c_pad - nb_class)))

    # ---- fused single-call fast path (whole problem VMEM-resident) ---------
    if fused_budget_bytes is None:
        cap = _vmem_capacity_bytes()
        fused_budget_bytes = (cap * 5) // 8     # ~80 MiB v5e/v6e, ~40 MiB v7x
    h_slab = m_total * h_pad * 4
    fused_need = (2 * m_total * n * 4                 # x (double-buffered)
                  + 2 * m_total * nb_class * 4        # out
                  + 3 * h_slab                        # h / centered / normed
                  + n * h_pad * 4 + h_pad * c_pad * 2
                  + 8 * h_pad * 4 + 2 * c_pad * 4
                  + (4 << 20))                        # slack

    if (not force_two_pass) and fused_need <= fused_budget_bytes:
        fused_limit = int(fused_budget_bytes) + (8 << 20)
        vec_h = pl.BlockSpec((1, h_pad), lambda i: (0, 0))
        out2d = pl.pallas_call(
            functools.partial(_fused_kernel, m_total=m_total,
                              nb_class=nb_class),
            grid=(1,),
            in_specs=[pl.BlockSpec((m_total, n), lambda i: (0, 0)),
                      pl.BlockSpec((n, h_pad), lambda i: (0, 0)),
                      vec_h, vec_h, vec_h,
                      pl.BlockSpec((h_pad, c_pad), lambda i: (0, 0)),
                      pl.BlockSpec((1, c_pad), lambda i: (0, 0))],
            out_specs=pl.BlockSpec((m_total, nb_class), lambda i: (0, 0)),
            out_shape=jax.ShapeDtypeStruct((m_total, nb_class), f32),
            compiler_params=pltpu.CompilerParams(
                dimension_semantics=("arbitrary",),
                vmem_limit_bytes=fused_limit),
        )(x2d, w1_p, b1_p, gamma_p, beta_p, w2_bf, b2_p)
        return out2d.reshape(seq, batch, nb_class)

    # ---- two-pass tiled path ------------------------------------------------
    tm = _round_up(min(tile_m, m_total), _SUBLANE)
    n_tiles = pl.cdiv(m_total, tm)
    # 2-way split of the stats reduction across core groups (v7x megacore);
    # only when it divides evenly so no fully-out-of-bounds blocks exist.
    groups = 2 if (n_tiles >= 2 and n_tiles % 2 == 0) else 1
    tiles_per_group = n_tiles // groups
    mask_rows = (m_total % tm) != 0
    first_pad_tile = m_total // tm            # only tiles >= this have padding

    w1_spec2 = pl.BlockSpec((n, h_pad), lambda c, i: (0, 0))
    b1_spec2 = pl.BlockSpec((1, h_pad), lambda c, i: (0, 0))
    x_spec2 = pl.BlockSpec((tm, n),
                           lambda c, i, _t=tiles_per_group: (c * _t + i, 0))
    acc_spec = pl.BlockSpec((1, 1, h_pad), lambda c, i: (c, 0, 0))

    # pass 1: per-group partial sums of h and h^2 over all valid rows
    part_sum, part_sq = pl.pallas_call(
        functools.partial(_stats_kernel, tm=tm, m_total=m_total,
                          tiles_per_group=tiles_per_group,
                          first_pad_tile=first_pad_tile, mask_rows=mask_rows),
        grid=(groups, tiles_per_group),
        in_specs=[x_spec2, w1_spec2, b1_spec2],
        out_specs=(acc_spec, acc_spec),
        out_shape=(jax.ShapeDtypeStruct((groups, 1, h_pad), f32),
                   jax.ShapeDtypeStruct((groups, 1, h_pad), f32)),
        compiler_params=pltpu.CompilerParams(
            dimension_semantics=("parallel", "arbitrary"),
            vmem_limit_bytes=vmem_limit_bytes),
    )(x2d, w1_p, b1_p)

    col_sum = jnp.sum(part_sum, axis=0)       # (1, h_pad)
    col_sq = jnp.sum(part_sq, axis=0)         # (1, h_pad)

    # pass 2: recompute h per tile, fold BN + second linear in-kernel.
    vec_h1 = pl.BlockSpec((1, h_pad), lambda i: (0, 0))
    out2d = pl.pallas_call(
        functools.partial(_apply_kernel, inv_m=1.0 / float(m_total),
                          nb_class=nb_class),
        grid=(n_tiles,),
        in_specs=[pl.BlockSpec((tm, n), lambda i: (i, 0)),
                  pl.BlockSpec((n, h_pad), lambda i: (0, 0)),
                  vec_h1,                       # b1
                  vec_h1,                       # col_sum
                  vec_h1,                       # col_sq
                  vec_h1,                       # gamma
                  vec_h1,                       # beta
                  pl.BlockSpec((h_pad, c_pad), lambda i: (0, 0)),   # w2 (bf16)
                  pl.BlockSpec((1, c_pad), lambda i: (0, 0))],      # b2
        out_specs=pl.BlockSpec((tm, nb_class), lambda i: (i, 0)),
        out_shape=jax.ShapeDtypeStruct((m_total, nb_class), f32),
        compiler_params=pltpu.CompilerParams(
            dimension_semantics=("parallel",),
            vmem_limit_bytes=vmem_limit_bytes),
    )(x2d, w1_p, b1_p, col_sum, col_sq, gamma_p, beta_p, w2_bf, b2_p)

    return out2d.reshape(seq, batch, nb_class)


# --------------------------------------------------------------------------
# Parameter init (mirrors the PyTorch module) and pure-JAX reference.
# --------------------------------------------------------------------------
def init_params(key, n, hidden, nb_class):
    k1, k2, k3, k4 = jax.random.split(key, 4)

    def xavier_uniform(k, fan_in, fan_out):
        limit = math.sqrt(6.0 / (fan_in + fan_out))
        return jax.random.uniform(k, (fan_in, fan_out), jnp.float32,
                                  minval=-limit, maxval=limit)

    def bias_default(k, fan_in, fan_out):
        bound = 1.0 / math.sqrt(fan_in)
        return jax.random.uniform(k, (1, fan_out), jnp.float32,
                                  minval=-bound, maxval=bound)

    w1 = xavier_uniform(k1, n, hidden)
    b1 = bias_default(k2, n, hidden)
    gamma = jnp.ones((1, hidden), jnp.float32)    # BatchNorm1d affine defaults
    beta = jnp.zeros((1, hidden), jnp.float32)
    w2 = xavier_uniform(k3, hidden, nb_class)
    b2 = bias_default(k4, hidden, nb_class)
    return (w1, b1, gamma, beta, w2, b2)


def prediction_reference(c_t, params):
    w1, b1, gamma, beta, w2, b2 = params
    seq, batch, n = c_t.shape
    x = c_t.reshape(seq * batch, n)
    h = _gelu_exact(x @ w1 + b1)
    mu = jnp.mean(h, axis=0, keepdims=True)
    var = jnp.mean((h - mu) ** 2, axis=0, keepdims=True)
    h = (h - mu) / jnp.sqrt(var + _BN_EPS) * gamma + beta
    out = h @ w2 + b2
    return out.reshape(seq, batch, -1)


def _check(seq, batch, n, hidden, nb_class, key, tile_m, force_two_pass):
    k_x, k_p = jax.random.split(key)
    c_t = jax.random.normal(k_x, (seq, batch, n), jnp.float32)
    params = init_params(k_p, n, hidden, nb_class)

    out = prediction_forward(c_t, params, tile_m=tile_m,
                             force_two_pass=force_two_pass)
    out = jax.block_until_ready(out)
    ref = prediction_reference(c_t, params)

    assert out.shape == (seq, batch, nb_class)
    # matmul2 uses bf16 operands (f32 accumulation) -> bf16-appropriate tol.
    err = float(jnp.max(jnp.abs(out - ref)))
    assert jnp.allclose(out, ref, rtol=2e-2, atol=2e-2), \
        f"mismatch vs reference, max abs err = {err}"


if __name__ == "__main__":
    key = jax.random.PRNGKey(0)
    k0, k1, k2 = jax.random.split(key, 3)

    # Fused single-call path, M not a multiple of 8.
    _check(seq=8, batch=2, n=16, hidden=32, nb_class=4, key=k0,
           tile_m=2048, force_two_pass=False)

    # Two-pass path, even tile count -> 2-way core-group stats split,
    # partial last tile exercises padded-row masking.
    _check(seq=40, batch=5, n=16, hidden=32, nb_class=4, key=k1,
           tile_m=64, force_two_pass=True)

    # Two-pass path, odd tile count -> single group, partial last tile.
    _check(seq=40, batch=5, n=16, hidden=32, nb_class=4, key=k2,
           tile_m=96, force_two_pass=True)

    print("KERNEL_OK")
</pallas_src>

<mosaic_0001>
module attributes {stable_mosaic.version = 11 : i64} {
  func.func @_fused_kernel(%arg0: i32, %arg1: memref<16x16xf32, #tpu.memory_space<vmem>>, %arg2: memref<16x128xf32, #tpu.memory_space<vmem>>, %arg3: memref<1x128xf32, #tpu.memory_space<vmem>>, %arg4: memref<1x128xf32, #tpu.memory_space<vmem>>, %arg5: memref<1x128xf32, #tpu.memory_space<vmem>>, %arg6: memref<128x128xbf16, #tpu.memory_space<vmem>>, %arg7: memref<1x128xf32, #tpu.memory_space<vmem>>, %arg8: memref<16x4xf32, #tpu.memory_space<vmem>>) attributes {dimension_semantics = [#tpu.dimension_semantics<arbitrary>], iteration_bounds = array<i64: 1>, scalar_prefetch = 0 : i64, scratch_operands = 0 : i64, tpu.core_type = #tpu.core_type<tc>, window_params = [{pipeline_mode = #tpu.pipeline_mode<synchronous>, transform_indices = @transform_0, window_bounds = array<i64: 16, 16>}, {pipeline_mode = #tpu.pipeline_mode<synchronous>, transform_indices = @transform_1, window_bounds = array<i64: 16, 128>}, {pipeline_mode = #tpu.pipeline_mode<synchronous>, transform_indices = @transform_2, window_bounds = array<i64: 1, 128>}, {pipeline_mode = #tpu.pipeline_mode<synchronous>, transform_indices = @transform_3, window_bounds = array<i64: 1, 128>}, {pipeline_mode = #tpu.pipeline_mode<synchronous>, transform_indices = @transform_4, window_bounds = array<i64: 1, 128>}, {pipeline_mode = #tpu.pipeline_mode<synchronous>, transform_indices = @transform_5, window_bounds = array<i64: 128, 128>}, {pipeline_mode = #tpu.pipeline_mode<synchronous>, transform_indices = @transform_6, window_bounds = array<i64: 1, 128>}, {pipeline_mode = #tpu.pipeline_mode<synchronous>, transform_indices = @transform_7, window_bounds = array<i64: 16, 4>}]} {
    %c0 = arith.constant 0 : index
    %c0_0 = arith.constant 0 : index
    %0 = vector.load %arg1[%c0, %c0_0] : memref<16x16xf32, #tpu.memory_space<vmem>>, vector<16x16xf32>
    %c0_1 = arith.constant 0 : index
    %c0_2 = arith.constant 0 : index
    %1 = vector.load %arg2[%c0_1, %c0_2] : memref<16x128xf32, #tpu.memory_space<vmem>>, vector<16x128xf32>
    %cst = arith.constant dense<0.000000e+00> : vector<16x128xf32>
    %2 = tpu.matmul %0, %1, %cst {dimension_numbers = #tpu.dot_dimension_numbers<[1], [0], [0], [1], [0, 0, 1, 1], [], []>} : vector<16x16xf32>, vector<16x128xf32>, vector<16x128xf32> -> vector<16x128xf32>
    %c0_3 = arith.constant 0 : index
    %c0_4 = arith.constant 0 : index
    %3 = vector.load %arg3[%c0_3, %c0_4] : memref<1x128xf32, #tpu.memory_space<vmem>>, vector<1x128xf32>
    %4 = vector.broadcast %3 : vector<1x128xf32> to vector<16x128xf32>
    %5 = arith.addf %2, %4 : vector<16x128xf32>
    %cst_5 = arith.constant 5.000000e-01 : f32
    %6 = vector.broadcast %cst_5 : f32 to vector<16x128xf32>
    %7 = arith.mulf %6, %5 : vector<16x128xf32>
    %cst_6 = arith.constant 0.707106769 : f32
    %8 = vector.broadcast %cst_6 : f32 to vector<16x128xf32>
    %9 = arith.mulf %5, %8 : vector<16x128xf32>
    %10 = math.erf %9 : vector<16x128xf32>
    %cst_7 = arith.constant 1.000000e+00 : f32
    %11 = vector.broadcast %cst_7 : f32 to vector<16x128xf32>
    %12 = arith.addf %11, %10 : vector<16x128xf32>
    %13 = arith.mulf %7, %12 : vector<16x128xf32>
    %cst_8 = arith.constant dense<0.000000e+00> : vector<128xf32>
    %14 = vector.multi_reduction <add>, %13, %cst_8 [0] : vector<16x128xf32> to vector<128xf32>
    %15 = vector.shape_cast %14 : vector<128xf32> to vector<1x128xf32>
    %cst_9 = arith.constant 6.250000e-02 : f32
    %16 = vector.broadcast %cst_9 : f32 to vector<1x128xf32>
    %17 = arith.mulf %15, %16 : vector<1x128xf32>
    %18 = vector.broadcast %17 : vector<1x128xf32> to vector<16x128xf32>
    %19 = arith.subf %13, %18 : vector<16x128xf32>
    %20 = arith.mulf %19, %19 : vector<16x128xf32>
    %cst_10 = arith.constant dense<0.000000e+00> : vector<128xf32>
    %21 = vector.multi_reduction <add>, %20, %cst_10 [0] : vector<16x128xf32> to vector<128xf32>
    %22 = vector.shape_cast %21 : vector<128xf32> to vector<1x128xf32>
    %cst_11 = arith.constant 6.250000e-02 : f32
    %23 = vector.broadcast %cst_11 : f32 to vector<1x128xf32>
    %24 = arith.mulf %22, %23 : vector<1x128xf32>
    %cst_12 = arith.constant 9.99999974E-6 : f32
    %25 = vector.broadcast %cst_12 : f32 to vector<1x128xf32>
    %26 = arith.addf %24, %25 : vector<1x128xf32>
    %27 = math.rsqrt %26 : vector<1x128xf32>
    %c0_13 = arith.constant 0 : index
    %c0_14 = arith.constant 0 : index
    %28 = vector.load %arg4[%c0_13, %c0_14] : memref<1x128xf32, #tpu.memory_space<vmem>>, vector<1x128xf32>
    %29 = arith.mulf %27, %28 : vector<1x128xf32>
    %c0_15 = arith.constant 0 : index
    %c0_16 = arith.constant 0 : index
    %30 = vector.load %arg5[%c0_15, %c0_16] : memref<1x128xf32, #tpu.memory_space<vmem>>, vector<1x128xf32>
    %31 = arith.mulf %17, %29 : vector<1x128xf32>
    %32 = arith.subf %30, %31 : vector<1x128xf32>
    %33 = vector.broadcast %29 : vector<1x128xf32> to vector<16x128xf32>
    %34 = arith.mulf %13, %33 : vector<16x128xf32>
    %35 = vector.broadcast %32 : vector<1x128xf32> to vector<16x128xf32>
    %36 = arith.addf %34, %35 : vector<16x128xf32>
    %37 = arith.truncf %36 : vector<16x128xf32> to vector<16x128xbf16>
    %c0_17 = arith.constant 0 : index
    %c0_18 = arith.constant 0 : index
    %38 = vector.load %arg6[%c0_17, %c0_18] : memref<128x128xbf16, #tpu.memory_space<vmem>>, vector<128x128xbf16>
    %cst_19 = arith.constant dense<0.000000e+00> : vector<16x128xf32>
    %39 = tpu.matmul %37, %38, %cst_19 {dimension_numbers = #tpu.dot_dimension_numbers<[1], [0], [0], [1], [0, 0, 1, 1], [], []>} : vector<16x128xbf16>, vector<128x128xbf16>, vector<16x128xf32> -> vector<16x128xf32>
    %c0_20 = arith.constant 0 : index
    %c0_21 = arith.constant 0 : index
    %40 = vector.load %arg7[%c0_20, %c0_21] : memref<1x128xf32, #tpu.memory_space<vmem>>, vector<1x128xf32>
    %41 = vector.broadcast %40 : vector<1x128xf32> to vector<16x128xf32>
    %42 = arith.addf %39, %41 : vector<16x128xf32>
    %43 = vector.extract_strided_slice %42 {offsets = [0, 0], sizes = [16, 4], strides = [1, 1]} : vector<16x128xf32> to vector<16x4xf32>
    %c0_22 = arith.constant 0 : index
    %c0_23 = arith.constant 0 : index
    %44 = vector.load %arg8[%c0_22, %c0_23] : memref<16x4xf32, #tpu.memory_space<vmem>>, vector<16x4xf32>
    tpu.vector_store %arg8[%c0_22, %c0_23], %43 {strides = array<i32>} : memref<16x4xf32, #tpu.memory_space<vmem>>, vector<16x4xf32>,
    return
  }
  func.func @transform_0(%arg0: i32) -> (i32, i32) {
    %c0_i32 = arith.constant 0 : i32
    %c0_i32_0 = arith.constant 0 : i32
    %c0_i32_1 = arith.constant 0 : i32
    return %c0_i32, %c0_i32_0 : i32, i32
  }
  func.func @transform_1(%arg0: i32) -> (i32, i32) {
    %c0_i32 = arith.constant 0 : i32
    %c0_i32_0 = arith.constant 0 : i32
    %c0_i32_1 = arith.constant 0 : i32
    return %c0_i32, %c0_i32_0 : i32, i32
  }
  func.func @transform_2(%arg0: i32) -> (i32, i32) {
    %c0_i32 = arith.constant 0 : i32
    %c0_i32_0 = arith.constant 0 : i32
    %c0_i32_1 = arith.constant 0 : i32
    return %c0_i32, %c0_i32_0 : i32, i32
  }
  func.func @transform_3(%arg0: i32) -> (i32, i32) {
    %c0_i32 = arith.constant 0 : i32
    %c0_i32_0 = arith.constant 0 : i32
    %c0_i32_1 = arith.constant 0 : i32
    return %c0_i32, %c0_i32_0 : i32, i32
  }
  func.func @transform_4(%arg0: i32) -> (i32, i32) {
    %c0_i32 = arith.constant 0 : i32
    %c0_i32_0 = arith.constant 0 : i32
    %c0_i32_1 = arith.constant 0 : i32
    return %c0_i32, %c0_i32_0 : i32, i32
  }
  func.func @transform_5(%arg0: i32) -> (i32, i32) {
    %c0_i32 = arith.constant 0 : i32
    %c0_i32_0 = arith.constant 0 : i32
    %c0_i32_1 = arith.constant 0 : i32
    return %c0_i32, %c0_i32_0 : i32, i32
  }
  func.func @transform_6(%arg0: i32) -> (i32, i32) {
    %c0_i32 = arith.constant 0 : i32
    %c0_i32_0 = arith.constant 0 : i32
    %c0_i32_1 = arith.constant 0 : i32
    return %c0_i32, %c0_i32_0 : i32, i32
  }
  func.func @transform_7(%arg0: i32) -> (i32, i32) {
    %c0_i32 = arith.constant 0 : i32
    %c0_i32_0 = arith.constant 0 : i32
    %c0_i32_1 = arith.constant 0 : i32
    return %c0_i32, %c0_i32_0 : i32, i32
  }
}

</mosaic_0001>

<bundles_post_ra>
// kernel: tpu_custom_call.1
= control target key start
LH: loop header
LB: loop body
LE: loop exit
PB: predicated region body
PF: predicated region fallthrough
CT: control target
= control target key end

     0   :  { %12 = vsyncpa [#allocation3], 0  ;;  %s593_s0 = inlined_call_operand.hbm [shape: f32[16,16], index: 0, kind: input, shape index: {}]   ;;  %s594_s1 = inlined_call_operand.hbm [shape: f32[16,128], index: 1, kind: input, shape index: {}]   ;;  %s595_s2 = inlined_call_operand.vmem [shape: f32[1,128], index: 2, kind: input, shape index: {}]   ;;  %s596_s3 = inlined_call_operand.vmem [shape: f32[1,128], index: 3, kind: input, shape index: {}]   ;;  %s597_s4 = inlined_call_operand.vmem [shape: f32[1,128], index: 4, kind: input, shape index: {}]   ;;  %s598_s5 = inlined_call_operand.hbm [shape: bf16[128,128], index: 5, kind: input, shape index: {}]   ;;  %s599_s6 = inlined_call_operand.vmem [shape: f32[1,128], index: 6, kind: input, shape index: {}]   ;;  %s600_s7 = inlined_call_operand.vmem [shape: f32[16,4], index: 7, kind: output, shape index: {}]  }
   0x1   :  { %13 = vsyncpa [#allocation5], 0  ;;  %s483_s24 = smov [#allocation4]   ;;  %s484_s26 = smov [#allocation2]  }
   0x2   :  { %s31_s25 = sshll.u32 %s483_s24, 4  ;;  %s19_s27 = sshll.u32 %s484_s26, 4  ;;  %s32_s25 = int_to_ptr.vmem [resolvable:$true] %s31_s25  ;;  %s532_s27 = int_to_ptr.vmem [resolvable:$true] %s19_s27 }
   0x3   :  { %s413_s30 = scalar_lea.hbm %s594_s1, 256 }
   0x4   :  { %p414_p0 = scmp.ne.s32.totalorder %s594_s1, %s413_s30  ;;  %p417_p1 = scmp.lt.u32.totalorder %s413_s30, %s594_s1 }
   0x6   :  { %p419_p2 = pnand %p417_p1, %p414_p0 }
   0x8   :  { %422 = shalt.err (!%p419_p2)
}
   0x9   :  { %s423_s12 = scalar_lea.vmem %s32_s25, 256  ;;  %p428_p4 = scmp.lt.s32.totalorder %s32_s25, %s32_s25 }
   0xa   :  { %p424_p3 = scmp.ne.s32.totalorder %s32_s25, %s423_s12  ;;  %p429_p5 = scmp.lt.s32.totalorder %s423_s12, %s423_s12 }
   0xc   :  { %p430_p6 = por %p429_p5, %p428_p4 }
   0xe   :  { %p431_p7 = pnand %p430_p6, %p424_p3 }
  0x10   :  { %434 = shalt.err (!%p431_p7)
}
  0x11   :  { %s485_s13 = smov 128   ;;  %s486_s14 = smov 8  }
  0x12   :  { %37 = dma.hbm_to_vmem [thread:$0]  %s594_s1, 256, %s32_s25, [#allocation5], %s485_s13, %s485_s13, %s486_s14  }
  0x13   :  { %s435_s19 = scalar_lea.hbm %s593_s0, 256 }
  0x14   :  { %p436_p8 = scmp.ne.s32.totalorder %s593_s0, %s435_s19  ;;  %p439_p9 = scmp.lt.u32.totalorder %s435_s19, %s593_s0 }
  0x16   :  { %p441_p10 = pnand %p439_p9, %p436_p8 }
  0x18   :  { %444 = shalt.err (!%p441_p10)
}
  0x19   :  { %s445_s24 = scalar_lea.vmem %s532_s27, 256  ;;  %p450_p12 = scmp.lt.s32.totalorder %s532_s27, %s532_s27 }
  0x1a   :  { %p446_p11 = scmp.ne.s32.totalorder %s532_s27, %s445_s24  ;;  %p451_p13 = scmp.lt.s32.totalorder %s445_s24, %s445_s24 }
  0x1c   :  { %p452_p0 = por %p451_p13, %p450_p12 }
  0x1e   :  { %p453_p1 = pnand %p452_p0, %p446_p11 }
  0x20   :  { %456 = shalt.err (!%p453_p1)
}
  0x21   :  { %25 = dma.hbm_to_vmem [thread:$0]  %s593_s0, 256, %s532_s27, [#allocation3], %s485_s13, %s485_s13, %s486_s14  }
  0x22   :  { %s487_s26 = smov [#allocation6]   ;;  %s457_s8 = scalar_lea.hbm %s598_s5, 1024 }
  0x23   :  { %s49_s28 = sshll.u32 %s487_s26, 4  ;;  %p458_p2 = scmp.ne.s32.totalorder %s598_s5, %s457_s8  ;;  %s50_s28 = int_to_ptr.vmem [resolvable:$true] %s49_s28 }
  0x24   :  { %p461_p3 = scmp.lt.u32.totalorder %s457_s8, %s598_s5 }
  0x26   :  { %p463_p4 = pnand %p461_p3, %p458_p2 }
  0x28   :  { %466 = shalt.err (!%p463_p4)
}
  0x29   :  { %s467_s15 = scalar_lea.vmem %s50_s28, 1024  ;;  %p472_p6 = scmp.lt.s32.totalorder %s50_s28, %s50_s28 }
  0x2a   :  { %p468_p5 = scmp.ne.s32.totalorder %s50_s28, %s467_s15  ;;  %p473_p7 = scmp.lt.s32.totalorder %s467_s15, %s467_s15 }
  0x2c   :  { %p474_p8 = por %p473_p7, %p472_p6 }
  0x2e   :  { %p475_p9 = pnand %p474_p8, %p468_p5 }
  0x30   :  { %478 = shalt.err (!%p475_p9)
}
  0x31   :  { %s488_s0 = smov 64   ;;  %s489_s27 = smov 4  }
  0x32   :  { %55 = dma.hbm_to_vmem [thread:$0]  %s598_s5, 1024, %s50_s28, [#allocation5], %s488_s0, %s488_s0, %s489_s27  }
  0x33   :  { %479 = dma.done.wait [#allocation3], 256  }
  0x34   :  { %480 = vsyncadd [#allocation3], 4294967040 }
  0x35   :  { %481 = dma.done.wait [#allocation5], 1280  }
  0x36   :  { %482 = vsyncadd [#allocation5], 4294966016  ;;  %vm79_vm0 = vcmask 130048   ;;  %v70_v0 = vld [vmem:[#allocation4] sm:$0xff]  ;;  %v71_v1 = vld [vmem:[#allocation4 + $0x8] sm:$0xff]  ;;  %v490_v6 = vmov 0.0   ;;  %v198_v50 = vlaneseq }
  0x37   :  { %v68_v2 = vld [vmem:[#allocation2] sm:$0xff]  ;;  %v386_v3 = vpack.c.bf16 %v71_v1, %v70_v0  ;;  %v69_v4 = vld [vmem:[#allocation2 + $0x8] sm:$0xff]  ;;  %366 = vmatprep.subr.bf16.mxu1 %v490_v6  ;;  %v401_v8 = vld [vmem:[#allocation6 + $0x10] sm:$0xff]   ;;  %vm491_vm1 = vmmov 0   ;;  %vm325_vm2 = vcmask 31744  }
  0x38   :  { %363 = vmatprep.mubr.msk.f32.mxu0 %vm79_vm0, %v68_v2  ;;  %v399_v5 = vld [vmem:[#allocation6] sm:$0xff]   ;;  %v400_v7 = vld [vmem:[#allocation6 + $0x8] sm:$0xff]   ;;  %v402_v9 = vld [vmem:[#allocation6 + $0x18] sm:$0xff]   ;;  %382 = vmatprep.mubr.msk.bf16.mxu1 %vm491_vm1, %v490_v6  ;;  %v199_v51 = vshrl.u32 %v198_v50, 7 }
  0x39   :  { %387 = vmatprep.subr.bf16.mxu0 %v386_v3  ;;  %367 = vmatpush3.bf16.msra.mxu1 %v399_v5  ;;  %v403_v10 = vld [vmem:[#allocation6 + $0x20] sm:$0xff]   ;;  %v404_v11 = vld [vmem:[#allocation6 + $0x28] sm:$0xff]   ;;  %v405_v12 = vld [vmem:[#allocation6 + $0x30] sm:$0xff]  }
  0x3a   :  { %389 = vmatpush3.bf16.msra.mxu0 %v386_v3  ;;  %368 = vmatprep.subr.bf16.mxu1 %v490_v6  ;;  %v406_v13 = vld [vmem:[#allocation6 + $0x38] sm:$0xff]   ;;  %v334_v14 = vld [vmem:[%s595_s2] ss:$0 sm:$0xff]  ;;  %v200_v53 = vsub.s32 0, %v199_v51 }
  0x3b   :  { %v193_v52 = vld [vmem:[%s596_s3] sm:$0x1] }
  0x3c   :  { %v195_v56 = vld [vmem:[%s597_s4] sm:$0x1] }
  0x3d   :  { %364 = vmatmul.mubr.msk.f32.vlgmr.msra.gmra.mrb[0].mxu0 %vm79_vm0, %v69_v4  ;;  %369 = vmatpush3.bf16.msra.mxu1 %v400_v7  ;;  %v337_v2 = vld [vmem:[%s599_s6] ss:$0 sm:$0xff] }
  0x3e   :  { %370 = vmatprep.subr.bf16.mxu1 %v490_v6 }
  0x41   :  { %371 = vmatpush3.bf16.msra.mxu1 %v401_v8 }
  0x42   :  { %372 = vmatprep.subr.bf16.mxu1 %v490_v6 }
  0x45   :  { %373 = vmatpush3.bf16.msra.mxu1 %v402_v9 }
  0x46   :  { %374 = vmatprep.subr.bf16.mxu1 %v490_v6 }
  0x49   :  { %375 = vmatpush3.bf16.msra.mxu1 %v403_v10 }
  0x4a   :  { %376 = vmatprep.subr.bf16.mxu1 %v490_v6 }
  0x4d   :  { %377 = vmatpush3.bf16.msra.mxu1 %v404_v11 }
  0x4e   :  { %378 = vmatprep.subr.bf16.mxu1 %v490_v6 }
  0x51   :  { %379 = vmatpush3.bf16.msra.mxu1 %v405_v12 }
  0x52   :  { %380 = vmatprep.subr.bf16.mxu1 %v490_v6 }
  0x55   :  { %381 = vmatpush3.bf16.msra.mxu1 %v406_v13 }
 0x110   :  { %v365_v15 = vpop.f32.mrb[0].mxu0 }
 0x111   :  { %v158_v16 = vadd.f32 %v365_v15, %v334_v14  ;;  %v152_v17 = vpop.f32.mrb[1].mxu0 }
 0x112   :  { %v153_v18 = vadd.f32 %v334_v14, %v152_v17 }
 0x113   :  { %v164_v19 = vmul.f32 0.70710677, %v158_v16  ;;  %v162_v23 = vmul.f32 0.5, %v158_v16 }
 0x114   :  { %v163_v20 = vmul.f32 0.70710677, %v153_v18  ;;  %v161_v25 = vmul.f32 0.5, %v153_v18 }
 0x115   :  { %407 = verf.f32 %v164_v19 }
 0x116   :  { %409 = verf.f32 %v163_v20 }
 0x11f   :  { %v408_v21 = vpop.eup %407 }
 0x120   :  { %v410_v22 = vpop.eup %409  ;;  %v168_v24 = vadd.f32 1.0, %v408_v21 }
 0x121   :  { %v167_v26 = vadd.f32 1.0, %v410_v22 }
 0x122   :  { %v170_v27 = vmul.f32 %v168_v24, %v162_v23 }
 0x123   :  { %v169_v28 = vmul.f32 %v167_v26, %v161_v25 }
 0x125   :  { %v171_v29 = vadd.f32 %v170_v27, %v169_v28 }
 0x127   :  { %v172_v30 = vrot.slane %v171_v29, 4 }
 0x129   :  { %v173_v31 = vadd.f32 %v172_v30, %v171_v29 }
 0x12b   :  { %v174_v32 = vrot.slane %v173_v31, 2 }
 0x12d   :  { %v175_v33 = vadd.f32 %v174_v32, %v173_v31 }
 0x12f   :  { %v176_v34 = vrot.slane %v175_v33, 1 }
 0x131   :  { %v177_v35 = vadd.f32 %v176_v34, %v175_v33 }
 0x133   :  { %v178_v36 = vmul.f32 0.0625, %v177_v35 }
 0x135   :  { %v179_v37 = vsub.f32 %v169_v28, %v178_v36  ;;  %v180_v38 = vsub.f32 %v170_v27, %v178_v36 }
 0x137   :  { %v181_v39 = vmul.f32 %v179_v37, %v179_v37  ;;  %v182_v40 = vmul.f32 %v180_v38, %v180_v38 }
 0x139   :  { %v183_v41 = vadd.f32 %v182_v40, %v181_v39 }
 0x13b   :  { %v184_v42 = vrot.slane %v183_v41, 4 }
 0x13d   :  { %v185_v43 = vadd.f32 %v184_v42, %v183_v41 }
 0x13f   :  { %v186_v44 = vrot.slane %v185_v43, 2 }
 0x141   :  { %v187_v45 = vadd.f32 %v186_v44, %v185_v43 }
 0x143   :  { %v188_v46 = vrot.slane %v187_v45, 1 }
 0x145   :  { %v189_v47 = vadd.f32 %v188_v46, %v187_v45 }
 0x147   :  { %v190_v48 = vmul.f32 0.0625, %v189_v47 }
 0x149   :  { %v191_v49 = vadd.f32 1e-05, %v190_v48 }
 0x14b   :  { %411 = vrsqrt.f32 %v191_v49 }
 0x155   :  { %v412_v54 = vpop.eup %411 }
 0x156   :  { %v194_v55 = vmul.f32 %v412_v54, %v193_v52 }
 0x158   :  { %v196_v57 = vmul.f32 %v194_v55, %v178_v36  ;;  %v201_v58 = vrot.slane %v194_v55, %v200_v53 }
 0x15a   :  { %v197_v59 = vsub.f32 %v195_v56, %v196_v57  ;;  %v202_v60 = vmul.f32 %v201_v58, %v169_v28  ;;  %v203_v61 = vmul.f32 %v201_v58, %v170_v27 }
 0x15c   :  { %v208_v62 = vrot.slane %v197_v59, %v200_v53 }
 0x15e   :  { %v210_v63 = vadd.f32 %v208_v62, %v202_v60  ;;  %v211_v0 = vadd.f32 %v208_v62, %v203_v61 }
 0x160   :  { %v212_v1 = vpack.c.bf16 %v211_v0, %v210_v63 }
 0x162   :  { %383 = vmatmul.mubr.bf16.vlgmr.msra.gmra.mrb[0].mxu1 %v212_v1 }
 0x235   :  { %v318_v3 = vpop.f32.mrb[0].mxu1 }
 0x236   :  { %v319_v4 = vadd.f32 %v337_v2, %v318_v3  ;;  %v384_v5 = vpop.f32.mrb[1].mxu1 }
 0x237   :  { %v321_v6 = vpop.f32.mrb[2].mxu1 }
 0x238   :  { %326 = vst.msk [vmem:[%s600_s7] sm:$0xff] %vm325_vm2, %v319_v4  ;;  %v322_v7 = vadd.f32 %v337_v2, %v321_v6  ;;  %v385_v8 = vpop.f32.mrb[3].mxu1 }
 0x23a   :  { %327 = vst.msk [vmem:[%s600_s7 + $0x8] sm:$0xff] %vm325_vm2, %v322_v7 }
 0x23b   :  { %332 = vsyncpa [#allocation3], 1 }
 0x23c   :  { %333 = vsyncpa [#allocation5], 1 }

</bundles_post_ra>
